<compile_context>
chip_gen: v5e
topology: v5e:2x2
jax: 0.10.0
libtpu: 0.0.40
codegen_flags: <defaults>
</compile_context>

<pallas_src>
import jax
import jax.numpy as jnp
import numpy as np
from jax.experimental import pallas as pl
from jax.experimental.pallas import tpu as pltpu


# --------------------------- kernel building block ----------------------------

def _attention_block(x, w1, gamma, beta, w2):
    """One CNNAttention block for a single batch element (channels-first).

    x     : [C, HW]  feature map (spatial flattened; HW on the lane axis)
    w1    : [A, C]   fc1 1x1-conv weight (PyTorch [out, in] layout)
    gamma : [A, 1]   LayerNorm weight
    beta  : [A, 1]   LayerNorm bias
    w2    : [C, A]   fc2 1x1-conv weight (PyTorch [out, in] layout)
    returns (attn * x [C, HW], attn [1, HW], avg_out [C, 1])
    """
    A = w1.shape[0]
    scale = A ** -0.5                       # static Python float

    # fc1 (1x1 conv == channel matmul) on the MXU.
    pre = jnp.dot(w1, x, preferred_element_type=jnp.float32)       # [A, HW]
    feat = jnp.maximum(pre, 0.0)                                   # relu(fc1(x))

    # cls token = relu(fc1(avgpool(x))) == relu(mean_hw(fc1(x))) (fc1 is linear,
    # bias-free) -> reuse `pre` with a lane reduction instead of a second matmul.
    cls = jnp.maximum(jnp.mean(pre, axis=-1, keepdims=True), 0.0)  # [A, 1]

    # LayerNorm over attn_dim (sublane axis), eps = 1e-5, affine.
    def layernorm(v):
        mu = jnp.mean(v, axis=0, keepdims=True)
        var = jnp.mean(jnp.square(v - mu), axis=0, keepdims=True)
        return (v - mu) * jax.lax.rsqrt(var + 1e-5) * gamma + beta

    featn = layernorm(feat)                                        # [A, HW]
    clsn = layernorm(cls)                                          # [A, 1]

    # Attention logits <clsn, featn>_A: VPU multiply + cross-sublane reduce
    # (keeps the MXU free for fc1/fc2).
    logits = jnp.sum(featn * clsn, axis=0, keepdims=True) * scale  # [1, HW]

    # Softmax over spatial positions (lane axis -> dense reductions).
    lmax = jnp.max(logits, axis=-1, keepdims=True)
    e = jnp.exp(logits - lmax)
    denom = jnp.sum(e, axis=-1, keepdims=True)
    attn = e * pl.reciprocal(denom, approx=True)                   # [1, HW]

    y = attn * x                                                   # [C, HW]

    # avg_out = fc2(avg_vector): uses the post-ReLU, pre-LayerNorm cls token.
    avg = jnp.dot(w2, cls, preferred_element_type=jnp.float32)     # [C, 1]
    return y, attn, avg


def _cnn_vit_kernel(x_ref,
                    w1a_ref, ga_ref, ba_ref, w2a_ref,
                    w1b_ref, gb_ref, bb_ref, w2b_ref,
                    y_ref, attn1_ref, attn2_ref, avg1_ref, avg2_ref):
    """Fused CNNViT forward for one batch element; intermediate stays in VMEM."""
    x = x_ref[0]                                                   # [C, HW]
    y1, a1, v1 = _attention_block(
        x, w1a_ref[...], ga_ref[...], ba_ref[...], w2a_ref[...])
    y2, a2, v2 = _attention_block(
        y1, w1b_ref[...], gb_ref[...], bb_ref[...], w2b_ref[...])

    y_ref[0] = y2.astype(y_ref.dtype)
    attn1_ref[0] = a1.astype(attn1_ref.dtype)
    attn2_ref[0] = a2.astype(attn2_ref.dtype)
    avg1_ref[0] = v1.astype(avg1_ref.dtype)
    avg2_ref[0] = v2.astype(avg2_ref.dtype)


def _weight_specs(A, C):
    # Constant index_map -> weights stay resident across grid steps.
    return [
        pl.BlockSpec((A, C), lambda b: (0, 0)),   # w1
        pl.BlockSpec((A, 1), lambda b: (0, 0)),   # gamma
        pl.BlockSpec((A, 1), lambda b: (0, 0)),   # beta
        pl.BlockSpec((C, A), lambda b: (0, 0)),   # w2
    ]


def cnn_vit_pallas(x_cf, params1, params2):
    """x_cf: [B, C, HW] f32.  params_i = (w1 [A,C], gamma [A,1], beta [A,1], w2 [C,A])."""
    B, C, HW = x_cf.shape
    A = params1[0].shape[0]

    # TODO(synk): at production sizes (C=1024/2048, HW=1024/256) also tile HW
    # with an online softmax if a single image exceeds the v7x 64 MiB VMEM.
    return pl.pallas_call(
        _cnn_vit_kernel,
        grid=(B,),
        in_specs=[pl.BlockSpec((1, C, HW), lambda b: (b, 0, 0))]
                 + _weight_specs(A, C) + _weight_specs(A, C),
        out_specs=(
            pl.BlockSpec((1, C, HW), lambda b: (b, 0, 0)),
            pl.BlockSpec((1, 1, HW), lambda b: (b, 0, 0)),
            pl.BlockSpec((1, 1, HW), lambda b: (b, 0, 0)),
            pl.BlockSpec((1, C, 1), lambda b: (b, 0, 0)),
            pl.BlockSpec((1, C, 1), lambda b: (b, 0, 0)),
        ),
        out_shape=(
            jax.ShapeDtypeStruct((B, C, HW), jnp.float32),   # attn2 * (attn1 * x)
            jax.ShapeDtypeStruct((B, 1, HW), jnp.float32),   # attn1 (lane-dense)
            jax.ShapeDtypeStruct((B, 1, HW), jnp.float32),   # attn2 (lane-dense)
            jax.ShapeDtypeStruct((B, C, 1), jnp.float32),    # avg_out1
            jax.ShapeDtypeStruct((B, C, 1), jnp.float32),    # avg_out2
        ),
        compiler_params=pltpu.CompilerParams(
            dimension_semantics=("parallel",)),
    )(x_cf, *params1, *params2)


# ------------------------------ CNNViT wrapper --------------------------------

def cnn_vit_forward(x_nchw, params1, params2):
    """Pallas CNNViT forward.

    Returns (x_out NCHW, attn1 [B,1,H,W], attn2 [B,1,H,W], avg_out1 [B,C], avg_out2 [B,C]).
    CNNViT.forward itself corresponds to the first three outputs.
    """
    B, C, H, W = x_nchw.shape
    x_cf = x_nchw.reshape(B, C, H * W)            # pure reshape, no transpose
    y2, attn1, attn2, avg1, avg2 = cnn_vit_pallas(x_cf, params1, params2)
    x_out = y2.reshape(B, C, H, W)                # pure reshape, no transpose
    return (x_out,
            attn1.reshape(B, 1, H, W),
            attn2.reshape(B, 1, H, W),
            avg1.reshape(B, C),
            avg2.reshape(B, C))


# ------------------------------ pure-JAX reference ----------------------------

def _cnn_attention_ref(x_nchw, w1, gamma, beta, w2):
    B, C, H, W = x_nchw.shape
    A = w1.shape[0]
    scale = A ** -0.5
    conv1x1 = lambda v, w: jnp.einsum('bchw,oc->bohw', v, w)

    avg = jnp.mean(x_nchw, axis=(2, 3), keepdims=True)                  # [B,C,1,1]
    avg_vec = jax.nn.relu(conv1x1(avg, w1))                             # [B,A,1,1]
    feat = jax.nn.relu(conv1x1(x_nchw, w1))                             # [B,A,H,W]
    feat = jnp.transpose(feat, (0, 2, 3, 1)).reshape(B, H * W, A)       # b (h w) d
    cls = jnp.transpose(avg_vec, (0, 2, 3, 1)).reshape(B, 1, A)

    g = gamma.reshape(-1)
    b_ = beta.reshape(-1)

    def ln(v):
        mu = v.mean(-1, keepdims=True)
        var = ((v - mu) ** 2).mean(-1, keepdims=True)
        return (v - mu) / jnp.sqrt(var + 1e-5) * g + b_

    featn, clsn = ln(feat), ln(cls)
    attn = jax.nn.softmax(jnp.einsum('bqa,bka->bqk', clsn, featn) * scale, axis=-1)
    attn_map = attn.reshape(B, 1, H, W)
    avg_out = conv1x1(avg_vec, w2).reshape(B, C)
    return attn_map * x_nchw, avg_out, attn_map


def _cnn_vit_ref(x_nchw, p1, p2):
    y1, avg1, attn1 = _cnn_attention_ref(x_nchw, *p1)
    y2, avg2, attn2 = _cnn_attention_ref(y1, *p2)
    return y2, attn1, attn2, avg1, avg2


# ----------------------------------- main --------------------------------------

if __name__ == "__main__":
    # Small shapes consistent with the module: NCHW input [B, in_channels, in_size, in_size]
    B, C, H, W = 2, 8, 8, 8
    A = 16                                           # attn_dim

    key = jax.random.PRNGKey(0)
    kx, kw1a, kw2a, kw1b, kw2b = jax.random.split(key, 5)
    x = jax.random.normal(kx, (B, C, H, W), jnp.float32)

    def make_params(kw1, kw2):
        w1 = jax.random.normal(kw1, (A, C), jnp.float32) * 0.1   # fc1 Conv2d(C->A,1) weight [out,in]
        w2 = jax.random.normal(kw2, (C, A), jnp.float32) * 0.1   # fc2 Conv2d(A->C,1) weight [out,in]
        gamma = jnp.ones((A, 1), jnp.float32)                    # LayerNorm defaults (weight=1)
        beta = jnp.zeros((A, 1), jnp.float32)                    # LayerNorm defaults (bias=0)
        return (w1, gamma, beta, w2)                             # same layout for kernel & reference

    p1 = make_params(kw1a, kw2a)
    p2 = make_params(kw1b, kw2b)

    # Run the fused Pallas kernel.
    out = jax.jit(cnn_vit_forward)(x, p1, p2)
    out = jax.block_until_ready(out)

    # Pure-JAX reference check (tolerance allows the approximate EUP reciprocal
    # used for the softmax denominator).
    ref = _cnn_vit_ref(x, p1, p2)
    for got, want in zip(out, ref):
        np.testing.assert_allclose(np.asarray(got), np.asarray(want),
                                   rtol=5e-3, atol=5e-3)

    print("KERNEL_OK")
</pallas_src>

<mosaic_0001>
module attributes {stable_mosaic.version = 11 : i64} {
  func.func @_cnn_vit_kernel(%arg0: i32, %arg1: memref<1x8x64xf32, #tpu.memory_space<vmem>>, %arg2: memref<16x8xf32, #tpu.memory_space<vmem>>, %arg3: memref<16x1xf32, #tpu.memory_space<vmem>>, %arg4: memref<16x1xf32, #tpu.memory_space<vmem>>, %arg5: memref<8x16xf32, #tpu.memory_space<vmem>>, %arg6: memref<16x8xf32, #tpu.memory_space<vmem>>, %arg7: memref<16x1xf32, #tpu.memory_space<vmem>>, %arg8: memref<16x1xf32, #tpu.memory_space<vmem>>, %arg9: memref<8x16xf32, #tpu.memory_space<vmem>>, %arg10: memref<1x8x64xf32, #tpu.memory_space<vmem>>, %arg11: memref<1x1x64xf32, #tpu.memory_space<vmem>>, %arg12: memref<1x1x64xf32, #tpu.memory_space<vmem>>, %arg13: memref<1x8x1xf32, #tpu.memory_space<vmem>>, %arg14: memref<1x8x1xf32, #tpu.memory_space<vmem>>) attributes {dimension_semantics = [#tpu.dimension_semantics<parallel>], iteration_bounds = array<i64: 2>, scalar_prefetch = 0 : i64, scratch_operands = 0 : i64, tpu.core_type = #tpu.core_type<tc>, window_params = [{transform_indices = @transform_0, window_bounds = array<i64: 1, 8, 64>}, {pipeline_mode = #tpu.pipeline_mode<synchronous>, transform_indices = @transform_1, window_bounds = array<i64: 16, 8>}, {pipeline_mode = #tpu.pipeline_mode<synchronous>, transform_indices = @transform_2, window_bounds = array<i64: 16, 1>}, {pipeline_mode = #tpu.pipeline_mode<synchronous>, transform_indices = @transform_3, window_bounds = array<i64: 16, 1>}, {pipeline_mode = #tpu.pipeline_mode<synchronous>, transform_indices = @transform_4, window_bounds = array<i64: 8, 16>}, {pipeline_mode = #tpu.pipeline_mode<synchronous>, transform_indices = @transform_5, window_bounds = array<i64: 16, 8>}, {pipeline_mode = #tpu.pipeline_mode<synchronous>, transform_indices = @transform_6, window_bounds = array<i64: 16, 1>}, {pipeline_mode = #tpu.pipeline_mode<synchronous>, transform_indices = @transform_7, window_bounds = array<i64: 16, 1>}, {pipeline_mode = #tpu.pipeline_mode<synchronous>, transform_indices = @transform_8, window_bounds = array<i64: 8, 16>}, {transform_indices = @transform_9, window_bounds = array<i64: 1, 8, 64>}, {transform_indices = @transform_10, window_bounds = array<i64: 1, 1, 64>}, {transform_indices = @transform_11, window_bounds = array<i64: 1, 1, 64>}, {transform_indices = @transform_12, window_bounds = array<i64: 1, 8, 1>}, {transform_indices = @transform_13, window_bounds = array<i64: 1, 8, 1>}]} {
    %c0 = arith.constant 0 : index
    %c0_0 = arith.constant 0 : index
    %c0_1 = arith.constant 0 : index
    %0 = vector.load %arg1[%c0, %c0_0, %c0_1] : memref<1x8x64xf32, #tpu.memory_space<vmem>>, vector<1x8x64xf32>
    %1 = vector.shape_cast %0 : vector<1x8x64xf32> to vector<8x64xf32>
    %c0_2 = arith.constant 0 : index
    %c0_3 = arith.constant 0 : index
    %2 = vector.load %arg2[%c0_2, %c0_3] : memref<16x8xf32, #tpu.memory_space<vmem>>, vector<16x8xf32>
    %c0_4 = arith.constant 0 : index
    %c0_5 = arith.constant 0 : index
    %3 = vector.load %arg3[%c0_4, %c0_5] : memref<16x1xf32, #tpu.memory_space<vmem>>, vector<16x1xf32>
    %c0_6 = arith.constant 0 : index
    %c0_7 = arith.constant 0 : index
    %4 = vector.load %arg4[%c0_6, %c0_7] : memref<16x1xf32, #tpu.memory_space<vmem>>, vector<16x1xf32>
    %c0_8 = arith.constant 0 : index
    %c0_9 = arith.constant 0 : index
    %5 = vector.load %arg5[%c0_8, %c0_9] : memref<8x16xf32, #tpu.memory_space<vmem>>, vector<8x16xf32>
    %cst = arith.constant dense<0.000000e+00> : vector<16x64xf32>
    %6 = tpu.matmul %2, %1, %cst {dimension_numbers = #tpu.dot_dimension_numbers<[1], [0], [0], [1], [0, 0, 1, 1], [], []>} : vector<16x8xf32>, vector<8x64xf32>, vector<16x64xf32> -> vector<16x64xf32>
    %cst_10 = arith.constant 0.000000e+00 : f32
    %7 = vector.broadcast %cst_10 : f32 to vector<16x64xf32>
    %8 = arith.maximumf %6, %7 : vector<16x64xf32>
    %cst_11 = arith.constant dense<0.000000e+00> : vector<16xf32>
    %9 = vector.multi_reduction <add>, %6, %cst_11 [1] : vector<16x64xf32> to vector<16xf32>
    %10 = vector.shape_cast %9 : vector<16xf32> to vector<16x1xf32>
    %cst_12 = arith.constant 6.400000e+01 : f32
    %11 = vector.broadcast %cst_12 : f32 to vector<16x1xf32>
    %12 = arith.divf %10, %11 : vector<16x1xf32>
    %cst_13 = arith.constant 0.000000e+00 : f32
    %13 = vector.broadcast %cst_13 : f32 to vector<16x1xf32>
    %14 = arith.maximumf %12, %13 : vector<16x1xf32>
    %cst_14 = arith.constant dense<0.000000e+00> : vector<64xf32>
    %15 = vector.multi_reduction <add>, %8, %cst_14 [0] : vector<16x64xf32> to vector<64xf32>
    %16 = vector.shape_cast %15 : vector<64xf32> to vector<1x64xf32>
    %cst_15 = arith.constant 1.600000e+01 : f32
    %17 = vector.broadcast %cst_15 : f32 to vector<1x64xf32>
    %18 = arith.divf %16, %17 : vector<1x64xf32>
    %19 = vector.broadcast %18 : vector<1x64xf32> to vector<16x64xf32>
    %20 = arith.subf %8, %19 : vector<16x64xf32>
    %21 = arith.mulf %20, %20 : vector<16x64xf32>
    %cst_16 = arith.constant dense<0.000000e+00> : vector<64xf32>
    %22 = vector.multi_reduction <add>, %21, %cst_16 [0] : vector<16x64xf32> to vector<64xf32>
    %23 = vector.shape_cast %22 : vector<64xf32> to vector<1x64xf32>
    %cst_17 = arith.constant 1.600000e+01 : f32
    %24 = vector.broadcast %cst_17 : f32 to vector<1x64xf32>
    %25 = arith.divf %23, %24 : vector<1x64xf32>
    %26 = vector.broadcast %18 : vector<1x64xf32> to vector<16x64xf32>
    %27 = arith.subf %8, %26 : vector<16x64xf32>
    %cst_18 = arith.constant 9.99999974E-6 : f32
    %28 = vector.broadcast %cst_18 : f32 to vector<1x64xf32>
    %29 = arith.addf %25, %28 : vector<1x64xf32>
    %30 = math.rsqrt %29 : vector<1x64xf32>
    %31 = vector.broadcast %30 : vector<1x64xf32> to vector<16x64xf32>
    %32 = arith.mulf %27, %31 : vector<16x64xf32>
    %33 = vector.broadcast %3 : vector<16x1xf32> to vector<16x64xf32>
    %34 = arith.mulf %32, %33 : vector<16x64xf32>
    %35 = vector.broadcast %4 : vector<16x1xf32> to vector<16x64xf32>
    %36 = arith.addf %34, %35 : vector<16x64xf32>
    %cst_19 = arith.constant dense<0.000000e+00> : vector<1xf32>
    %37 = vector.multi_reduction <add>, %14, %cst_19 [0] : vector<16x1xf32> to vector<1xf32>
    %38 = vector.shape_cast %37 : vector<1xf32> to vector<1x1xf32>
    %cst_20 = arith.constant 1.600000e+01 : f32
    %39 = vector.broadcast %cst_20 : f32 to vector<1x1xf32>
    %40 = arith.divf %38, %39 : vector<1x1xf32>
    %41 = vector.broadcast %40 : vector<1x1xf32> to vector<16x1xf32>
    %42 = arith.subf %14, %41 : vector<16x1xf32>
    %43 = arith.mulf %42, %42 : vector<16x1xf32>
    %cst_21 = arith.constant dense<0.000000e+00> : vector<1xf32>
    %44 = vector.multi_reduction <add>, %43, %cst_21 [0] : vector<16x1xf32> to vector<1xf32>
    %45 = vector.shape_cast %44 : vector<1xf32> to vector<1x1xf32>
    %cst_22 = arith.constant 1.600000e+01 : f32
    %46 = vector.broadcast %cst_22 : f32 to vector<1x1xf32>
    %47 = arith.divf %45, %46 : vector<1x1xf32>
    %48 = vector.broadcast %40 : vector<1x1xf32> to vector<16x1xf32>
    %49 = arith.subf %14, %48 : vector<16x1xf32>
    %cst_23 = arith.constant 9.99999974E-6 : f32
    %50 = vector.broadcast %cst_23 : f32 to vector<1x1xf32>
    %51 = arith.addf %47, %50 : vector<1x1xf32>
    %52 = math.rsqrt %51 : vector<1x1xf32>
    %53 = vector.broadcast %52 : vector<1x1xf32> to vector<16x1xf32>
    %54 = arith.mulf %49, %53 : vector<16x1xf32>
    %55 = arith.mulf %54, %3 : vector<16x1xf32>
    %56 = arith.addf %55, %4 : vector<16x1xf32>
    %57 = vector.broadcast %56 : vector<16x1xf32> to vector<16x64xf32>
    %58 = arith.mulf %36, %57 : vector<16x64xf32>
    %cst_24 = arith.constant dense<0.000000e+00> : vector<64xf32>
    %59 = vector.multi_reduction <add>, %58, %cst_24 [0] : vector<16x64xf32> to vector<64xf32>
    %60 = vector.shape_cast %59 : vector<64xf32> to vector<1x64xf32>
    %cst_25 = arith.constant 2.500000e-01 : f32
    %61 = vector.broadcast %cst_25 : f32 to vector<1x64xf32>
    %62 = arith.mulf %60, %61 : vector<1x64xf32>
    %cst_26 = arith.constant dense<0xFF800000> : vector<1xf32>
    %63 = vector.multi_reduction <maximumf>, %62, %cst_26 [1] : vector<1x64xf32> to vector<1xf32>
    %64 = vector.shape_cast %63 : vector<1xf32> to vector<1x1xf32>
    %65 = vector.broadcast %64 : vector<1x1xf32> to vector<1x64xf32>
    %66 = arith.subf %62, %65 : vector<1x64xf32>
    %67 = math.exp %66 : vector<1x64xf32>
    %cst_27 = arith.constant dense<0.000000e+00> : vector<1xf32>
    %68 = vector.multi_reduction <add>, %67, %cst_27 [1] : vector<1x64xf32> to vector<1xf32>
    %69 = vector.shape_cast %68 : vector<1xf32> to vector<1x1xf32>
    %70 = tpu.reciprocal %69 {approx = true} : vector<1x1xf32> -> vector<1x1xf32>
    %71 = vector.broadcast %70 : vector<1x1xf32> to vector<1x64xf32>
    %72 = arith.mulf %67, %71 : vector<1x64xf32>
    %73 = vector.broadcast %72 : vector<1x64xf32> to vector<8x64xf32>
    %74 = arith.mulf %73, %1 : vector<8x64xf32>
    %cst_28 = arith.constant dense<0.000000e+00> : vector<8x1xf32>
    %75 = tpu.matmul %5, %14, %cst_28 {dimension_numbers = #tpu.dot_dimension_numbers<[1], [0], [0], [1], [0, 0, 1, 1], [], []>} : vector<8x16xf32>, vector<16x1xf32>, vector<8x1xf32> -> vector<8x1xf32>
    %c0_29 = arith.constant 0 : index
    %c0_30 = arith.constant 0 : index
    %76 = vector.load %arg6[%c0_29, %c0_30] : memref<16x8xf32, #tpu.memory_space<vmem>>, vector<16x8xf32>
    %c0_31 = arith.constant 0 : index
    %c0_32 = arith.constant 0 : index
    %77 = vector.load %arg7[%c0_31, %c0_32] : memref<16x1xf32, #tpu.memory_space<vmem>>, vector<16x1xf32>
    %c0_33 = arith.constant 0 : index
    %c0_34 = arith.constant 0 : index
    %78 = vector.load %arg8[%c0_33, %c0_34] : memref<16x1xf32, #tpu.memory_space<vmem>>, vector<16x1xf32>
    %c0_35 = arith.constant 0 : index
    %c0_36 = arith.constant 0 : index
    %79 = vector.load %arg9[%c0_35, %c0_36] : memref<8x16xf32, #tpu.memory_space<vmem>>, vector<8x16xf32>
    %cst_37 = arith.constant dense<0.000000e+00> : vector<16x64xf32>
    %80 = tpu.matmul %76, %74, %cst_37 {dimension_numbers = #tpu.dot_dimension_numbers<[1], [0], [0], [1], [0, 0, 1, 1], [], []>} : vector<16x8xf32>, vector<8x64xf32>, vector<16x64xf32> -> vector<16x64xf32>
    %cst_38 = arith.constant 0.000000e+00 : f32
    %81 = vector.broadcast %cst_38 : f32 to vector<16x64xf32>
    %82 = arith.maximumf %80, %81 : vector<16x64xf32>
    %cst_39 = arith.constant dense<0.000000e+00> : vector<16xf32>
    %83 = vector.multi_reduction <add>, %80, %cst_39 [1] : vector<16x64xf32> to vector<16xf32>
    %84 = vector.shape_cast %83 : vector<16xf32> to vector<16x1xf32>
    %cst_40 = arith.constant 6.400000e+01 : f32
    %85 = vector.broadcast %cst_40 : f32 to vector<16x1xf32>
    %86 = arith.divf %84, %85 : vector<16x1xf32>
    %cst_41 = arith.constant 0.000000e+00 : f32
    %87 = vector.broadcast %cst_41 : f32 to vector<16x1xf32>
    %88 = arith.maximumf %86, %87 : vector<16x1xf32>
    %cst_42 = arith.constant dense<0.000000e+00> : vector<64xf32>
    %89 = vector.multi_reduction <add>, %82, %cst_42 [0] : vector<16x64xf32> to vector<64xf32>
    %90 = vector.shape_cast %89 : vector<64xf32> to vector<1x64xf32>
    %cst_43 = arith.constant 1.600000e+01 : f32
    %91 = vector.broadcast %cst_43 : f32 to vector<1x64xf32>
    %92 = arith.divf %90, %91 : vector<1x64xf32>
    %93 = vector.broadcast %92 : vector<1x64xf32> to vector<16x64xf32>
    %94 = arith.subf %82, %93 : vector<16x64xf32>
    %95 = arith.mulf %94, %94 : vector<16x64xf32>
    %cst_44 = arith.constant dense<0.000000e+00> : vector<64xf32>
    %96 = vector.multi_reduction <add>, %95, %cst_44 [0] : vector<16x64xf32> to vector<64xf32>
    %97 = vector.shape_cast %96 : vector<64xf32> to vector<1x64xf32>
    %cst_45 = arith.constant 1.600000e+01 : f32
    %98 = vector.broadcast %cst_45 : f32 to vector<1x64xf32>
    %99 = arith.divf %97, %98 : vector<1x64xf32>
    %100 = vector.broadcast %92 : vector<1x64xf32> to vector<16x64xf32>
    %101 = arith.subf %82, %100 : vector<16x64xf32>
    %cst_46 = arith.constant 9.99999974E-6 : f32
    %102 = vector.broadcast %cst_46 : f32 to vector<1x64xf32>
    %103 = arith.addf %99, %102 : vector<1x64xf32>
    %104 = math.rsqrt %103 : vector<1x64xf32>
    %105 = vector.broadcast %104 : vector<1x64xf32> to vector<16x64xf32>
    %106 = arith.mulf %101, %105 : vector<16x64xf32>
    %107 = vector.broadcast %77 : vector<16x1xf32> to vector<16x64xf32>
    %108 = arith.mulf %106, %107 : vector<16x64xf32>
    %109 = vector.broadcast %78 : vector<16x1xf32> to vector<16x64xf32>
    %110 = arith.addf %108, %109 : vector<16x64xf32>
    %cst_47 = arith.constant dense<0.000000e+00> : vector<1xf32>
    %111 = vector.multi_reduction <add>, %88, %cst_47 [0] : vector<16x1xf32> to vector<1xf32>
    %112 = vector.shape_cast %111 : vector<1xf32> to vector<1x1xf32>
    %cst_48 = arith.constant 1.600000e+01 : f32
    %113 = vector.broadcast %cst_48 : f32 to vector<1x1xf32>
    %114 = arith.divf %112, %113 : vector<1x1xf32>
    %115 = vector.broadcast %114 : vector<1x1xf32> to vector<16x1xf32>
    %116 = arith.subf %88, %115 : vector<16x1xf32>
    %117 = arith.mulf %116, %116 : vector<16x1xf32>
    %cst_49 = arith.constant dense<0.000000e+00> : vector<1xf32>
    %118 = vector.multi_reduction <add>, %117, %cst_49 [0] : vector<16x1xf32> to vector<1xf32>
    %119 = vector.shape_cast %118 : vector<1xf32> to vector<1x1xf32>
    %cst_50 = arith.constant 1.600000e+01 : f32
    %120 = vector.broadcast %cst_50 : f32 to vector<1x1xf32>
    %121 = arith.divf %119, %120 : vector<1x1xf32>
    %122 = vector.broadcast %114 : vector<1x1xf32> to vector<16x1xf32>
    %123 = arith.subf %88, %122 : vector<16x1xf32>
    %cst_51 = arith.constant 9.99999974E-6 : f32
    %124 = vector.broadcast %cst_51 : f32 to vector<1x1xf32>
    %125 = arith.addf %121, %124 : vector<1x1xf32>
    %126 = math.rsqrt %125 : vector<1x1xf32>
    %127 = vector.broadcast %126 : vector<1x1xf32> to vector<16x1xf32>
    %128 = arith.mulf %123, %127 : vector<16x1xf32>
    %129 = arith.mulf %128, %77 : vector<16x1xf32>
    %130 = arith.addf %129, %78 : vector<16x1xf32>
    %131 = vector.broadcast %130 : vector<16x1xf32> to vector<16x64xf32>
    %132 = arith.mulf %110, %131 : vector<16x64xf32>
    %cst_52 = arith.constant dense<0.000000e+00> : vector<64xf32>
    %133 = vector.multi_reduction <add>, %132, %cst_52 [0] : vector<16x64xf32> to vector<64xf32>
    %134 = vector.shape_cast %133 : vector<64xf32> to vector<1x64xf32>
    %cst_53 = arith.constant 2.500000e-01 : f32
    %135 = vector.broadcast %cst_53 : f32 to vector<1x64xf32>
    %136 = arith.mulf %134, %135 : vector<1x64xf32>
    %cst_54 = arith.constant dense<0xFF800000> : vector<1xf32>
    %137 = vector.multi_reduction <maximumf>, %136, %cst_54 [1] : vector<1x64xf32> to vector<1xf32>
    %138 = vector.shape_cast %137 : vector<1xf32> to vector<1x1xf32>
    %139 = vector.broadcast %138 : vector<1x1xf32> to vector<1x64xf32>
    %140 = arith.subf %136, %139 : vector<1x64xf32>
    %141 = math.exp %140 : vector<1x64xf32>
    %cst_55 = arith.constant dense<0.000000e+00> : vector<1xf32>
    %142 = vector.multi_reduction <add>, %141, %cst_55 [1] : vector<1x64xf32> to vector<1xf32>
    %143 = vector.shape_cast %142 : vector<1xf32> to vector<1x1xf32>
    %144 = tpu.reciprocal %143 {approx = true} : vector<1x1xf32> -> vector<1x1xf32>
    %145 = vector.broadcast %144 : vector<1x1xf32> to vector<1x64xf32>
    %146 = arith.mulf %141, %145 : vector<1x64xf32>
    %147 = vector.broadcast %146 : vector<1x64xf32> to vector<8x64xf32>
    %148 = arith.mulf %147, %74 : vector<8x64xf32>
    %cst_56 = arith.constant dense<0.000000e+00> : vector<8x1xf32>
    %149 = tpu.matmul %79, %88, %cst_56 {dimension_numbers = #tpu.dot_dimension_numbers<[1], [0], [0], [1], [0, 0, 1, 1], [], []>} : vector<8x16xf32>, vector<16x1xf32>, vector<8x1xf32> -> vector<8x1xf32>
    %c0_57 = arith.constant 0 : index
    %c0_58 = arith.constant 0 : index
    %c0_59 = arith.constant 0 : index
    %150 = vector.load %arg10[%c0_57, %c0_58, %c0_59] : memref<1x8x64xf32, #tpu.memory_space<vmem>>, vector<1x8x64xf32>
    %151 = vector.shape_cast %150 : vector<1x8x64xf32> to vector<8x64xf32>
    %152 = vector.shape_cast %148 : vector<8x64xf32> to vector<1x8x64xf32>
    tpu.vector_store %arg10[%c0_57, %c0_58, %c0_59], %152 {strides = array<i32>} : memref<1x8x64xf32, #tpu.memory_space<vmem>>, vector<1x8x64xf32>,
    %c0_60 = arith.constant 0 : index
    %c0_61 = arith.constant 0 : index
    %c0_62 = arith.constant 0 : index
    %153 = vector.load %arg11[%c0_60, %c0_61, %c0_62] : memref<1x1x64xf32, #tpu.memory_space<vmem>>, vector<1x1x64xf32>
    %154 = vector.shape_cast %153 : vector<1x1x64xf32> to vector<1x64xf32>
    %155 = vector.shape_cast %72 : vector<1x64xf32> to vector<1x1x64xf32>
    tpu.vector_store %arg11[%c0_60, %c0_61, %c0_62], %155 {strides = array<i32>} : memref<1x1x64xf32, #tpu.memory_space<vmem>>, vector<1x1x64xf32>,
    %c0_63 = arith.constant 0 : index
    %c0_64 = arith.constant 0 : index
    %c0_65 = arith.constant 0 : index
    %156 = vector.load %arg12[%c0_63, %c0_64, %c0_65] : memref<1x1x64xf32, #tpu.memory_space<vmem>>, vector<1x1x64xf32>
    %157 = vector.shape_cast %156 : vector<1x1x64xf32> to vector<1x64xf32>
    %158 = vector.shape_cast %146 : vector<1x64xf32> to vector<1x1x64xf32>
    tpu.vector_store %arg12[%c0_63, %c0_64, %c0_65], %158 {strides = array<i32>} : memref<1x1x64xf32, #tpu.memory_space<vmem>>, vector<1x1x64xf32>,
    %c0_66 = arith.constant 0 : index
    %c0_67 = arith.constant 0 : index
    %c0_68 = arith.constant 0 : index
    %159 = vector.load %arg13[%c0_66, %c0_67, %c0_68] : memref<1x8x1xf32, #tpu.memory_space<vmem>>, vector<1x8x1xf32>
    %160 = vector.shape_cast %159 : vector<1x8x1xf32> to vector<8x1xf32>
    %161 = vector.shape_cast %75 : vector<8x1xf32> to vector<1x8x1xf32>
    tpu.vector_store %arg13[%c0_66, %c0_67, %c0_68], %161 {strides = array<i32>} : memref<1x8x1xf32, #tpu.memory_space<vmem>>, vector<1x8x1xf32>,
    %c0_69 = arith.constant 0 : index
    %c0_70 = arith.constant 0 : index
    %c0_71 = arith.constant 0 : index
    %162 = vector.load %arg14[%c0_69, %c0_70, %c0_71] : memref<1x8x1xf32, #tpu.memory_space<vmem>>, vector<1x8x1xf32>
    %163 = vector.shape_cast %162 : vector<1x8x1xf32> to vector<8x1xf32>
    %164 = vector.shape_cast %149 : vector<8x1xf32> to vector<1x8x1xf32>
    tpu.vector_store %arg14[%c0_69, %c0_70, %c0_71], %164 {strides = array<i32>} : memref<1x8x1xf32, #tpu.memory_space<vmem>>, vector<1x8x1xf32>,
    return
  }
  func.func @transform_0(%arg0: i32) -> (i32, i32, i32) {
    %c0_i32 = arith.constant 0 : i32
    %c0_i32_0 = arith.constant 0 : i32
    %c0_i32_1 = arith.constant 0 : i32
    return %arg0, %c0_i32, %c0_i32_0 : i32, i32, i32
  }
  func.func @transform_1(%arg0: i32) -> (i32, i32) {
    %c0_i32 = arith.constant 0 : i32
    %c0_i32_0 = arith.constant 0 : i32
    %c0_i32_1 = arith.constant 0 : i32
    return %c0_i32, %c0_i32_0 : i32, i32
  }
  func.func @transform_2(%arg0: i32) -> (i32, i32) {
    %c0_i32 = arith.constant 0 : i32
    %c0_i32_0 = arith.constant 0 : i32
    %c0_i32_1 = arith.constant 0 : i32
    return %c0_i32, %c0_i32_0 : i32, i32
  }
  func.func @transform_3(%arg0: i32) -> (i32, i32) {
    %c0_i32 = arith.constant 0 : i32
    %c0_i32_0 = arith.constant 0 : i32
    %c0_i32_1 = arith.constant 0 : i32
    return %c0_i32, %c0_i32_0 : i32, i32
  }
  func.func @transform_4(%arg0: i32) -> (i32, i32) {
    %c0_i32 = arith.constant 0 : i32
    %c0_i32_0 = arith.constant 0 : i32
    %c0_i32_1 = arith.constant 0 : i32
    return %c0_i32, %c0_i32_0 : i32, i32
  }
  func.func @transform_5(%arg0: i32) -> (i32, i32) {
    %c0_i32 = arith.constant 0 : i32
    %c0_i32_0 = arith.constant 0 : i32
    %c0_i32_1 = arith.constant 0 : i32
    return %c0_i32, %c0_i32_0 : i32, i32
  }
  func.func @transform_6(%arg0: i32) -> (i32, i32) {
    %c0_i32 = arith.constant 0 : i32
    %c0_i32_0 = arith.constant 0 : i32
    %c0_i32_1 = arith.constant 0 : i32
    return %c0_i32, %c0_i32_0 : i32, i32
  }
  func.func @transform_7(%arg0: i32) -> (i32, i32) {
    %c0_i32 = arith.constant 0 : i32
    %c0_i32_0 = arith.constant 0 : i32
    %c0_i32_1 = arith.constant 0 : i32
    return %c0_i32, %c0_i32_0 : i32, i32
  }
  func.func @transform_8(%arg0: i32) -> (i32, i32) {
    %c0_i32 = arith.constant 0 : i32
    %c0_i32_0 = arith.constant 0 : i32
    %c0_i32_1 = arith.constant 0 : i32
    return %c0_i32, %c0_i32_0 : i32, i32
  }
  func.func @transform_9(%arg0: i32) -> (i32, i32, i32) {
    %c0_i32 = arith.constant 0 : i32
    %c0_i32_0 = arith.constant 0 : i32
    %c0_i32_1 = arith.constant 0 : i32
    return %arg0, %c0_i32, %c0_i32_0 : i32, i32, i32
  }
  func.func @transform_10(%arg0: i32) -> (i32, i32, i32) {
    %c0_i32 = arith.constant 0 : i32
    %c0_i32_0 = arith.constant 0 : i32
    %c0_i32_1 = arith.constant 0 : i32
    return %arg0, %c0_i32, %c0_i32_0 : i32, i32, i32
  }
  func.func @transform_11(%arg0: i32) -> (i32, i32, i32) {
    %c0_i32 = arith.constant 0 : i32
    %c0_i32_0 = arith.constant 0 : i32
    %c0_i32_1 = arith.constant 0 : i32
    return %arg0, %c0_i32, %c0_i32_0 : i32, i32, i32
  }
  func.func @transform_12(%arg0: i32) -> (i32, i32, i32) {
    %c0_i32 = arith.constant 0 : i32
    %c0_i32_0 = arith.constant 0 : i32
    %c0_i32_1 = arith.constant 0 : i32
    return %arg0, %c0_i32, %c0_i32_0 : i32, i32, i32
  }
  func.func @transform_13(%arg0: i32) -> (i32, i32, i32) {
    %c0_i32 = arith.constant 0 : i32
    %c0_i32_0 = arith.constant 0 : i32
    %c0_i32_1 = arith.constant 0 : i32
    return %arg0, %c0_i32, %c0_i32_0 : i32, i32, i32
  }
}

</mosaic_0001>

<bundles_post_ra>
// kernel: cnn_vit_forward.1
= control target key start
LH: loop header
LB: loop body
LE: loop exit
PB: predicated region body
PF: predicated region fallthrough
CT: control target
= control target key end

     0   :  { %s1201_s25 = smov 0   ;;  %s1366_s0 = inlined_call_operand.vmem [shape: f32[2,8,64], index: 0, kind: input, shape index: {}]   ;;  %s1367_s1 = inlined_call_operand.vmem [shape: f32[16,8], index: 1, kind: input, shape index: {}]   ;;  %s1368_s2 = inlined_call_operand.vmem [shape: f32[16,1], index: 2, kind: input, shape index: {}]   ;;  %s1369_s3 = inlined_call_operand.vmem [shape: f32[16,1], index: 3, kind: input, shape index: {}]   ;;  %s1370_s4 = inlined_call_operand.vmem [shape: f32[8,16], index: 4, kind: input, shape index: {}]   ;;  %s1371_s5 = inlined_call_operand.vmem [shape: f32[16,8], index: 5, kind: input, shape index: {}]   ;;  %s1372_s6 = inlined_call_operand.vmem [shape: f32[16,1], index: 6, kind: input, shape index: {}]   ;;  %s1373_s7 = inlined_call_operand.vmem [shape: f32[16,1], index: 7, kind: input, shape index: {}]   ;;  %s1374_s8 = inlined_call_operand.vmem [shape: f32[8,16], index: 8, kind: input, shape index: {}]   ;;  %s1375_s9 = inlined_call_operand.vmem [shape: f32[2,8,64], index: 9, kind: output, shape index: {0}]   ;;  %s1376_s10 = inlined_call_operand.vmem [shape: f32[2,1,64], index: 10, kind: output, shape index: {1}]   ;;  %s1377_s11 = inlined_call_operand.vmem [shape: f32[2,1,64], index: 11, kind: output, shape index: {2}]   ;;  %s1378_s12 = inlined_call_operand.vmem [shape: f32[2,8,1], index: 12, kind: output, shape index: {3}]   ;;  %s1379_s13 = inlined_call_operand.vmem [shape: f32[2,8,1], index: 13, kind: output, shape index: {4}]  }
   0x1 LB: > { %s1069_s26 = sadd.s32 4294967295, %s1126_s25   ;;  %p1073_p0 = scmp.ge.s32.totalorder %s1126_s25, 1  ;;  %s1126_s25 = sphi %s1201_s25, %s24_s25  }
   0x2   : > { %p395_p1 = scmp.lt.s32.totalorder %s1126_s25, 3 }
   0x4   : > { %p396_p2 = pnand %p1073_p0, %p395_p1 }
   0x5   : > { %p451_p3 = scmp.lt.s32.totalorder (!%p396_p2), %s1069_s26, 1 }
   0x6   : > { %399 = sbr.rel (%p396_p2) target bundleno = 1438 (0x59e), region = 56 }
   0xb   : > { %v1212_v0 = vld [vmem:[%s1368_s2] sm:$0xff]  ;;  %v1128_v1 = vmov 0   ;;  %s1381_s26 = smov (!%p451_p3, %s1069_s26), 1  ;;  %vm481_vm0 = vcmask 64512   ;;  %v1239_v5 = vld [vmem:[%s1368_s2 + $0x8] sm:$0xff]  ;;  %vm513_vm1 = vcmask 523264  }
   0xc   : > { %1097 = vset.pattern.permute.xlu1 %v1128_v1  ;;  %1098 = vset.pattern.permute.xlu2 %v1128_v1  ;;  %v1217_v2 = vld [vmem:[%s1369_s3] sm:$0xff]  ;;  %s1224_s14 = sshll.u32 %s1381_s26, 3  ;;  %v1244_v6 = vld [vmem:[%s1369_s3 + $0x8] sm:$0xff]  ;;  %v1129_v8 = vmov 16.0   ;;  %v1130_v55 = vmov 64.0   ;;  %s461_s18 = scalar_lea.vmem %s1376_s10, %s1381_s26  ;;  %vm898_vm10 = vcmask 516096  }
   0xd   : > { %577 = vperm.xlu1 %1097, %v1212_v0   ;;  %589 = vperm.xlu2 %1098, %v1217_v2   ;;  %s454_s17 = scalar_lea.vmem %s1366_s0, %s1224_s14  ;;  %v474_v3 = vld [vmem:[%s1367_s1] sm:$0xff]  ;;  %v475_v7 = vld [vmem:[%s1367_s1 + $0x8] sm:$0xff]  ;;  %1100 = vrcp.f32 %v1129_v8  ;;  %s468_s19 = scalar_lea.vmem %s1378_s12, %s1224_s14 }
   0xe   : > { %1099 = vset.pattern.permute.xlu0 %v1128_v1  ;;  %v1233_v4 = vld [vmem:[%s454_s17] sm:$0xff]  ;;  %s472_s22 = scalar_lea.vmem %s1379_s13, %s1224_s14  ;;  %s464_s27 = scalar_lea.vmem %s1377_s11, %s1381_s26 }
   0xf   : > { %503 = vmatpush.msra.mxu0 %v1233_v4  ;;  %s458_s30 = scalar_lea.vmem %s1375_s9, %s1224_s14 }
  0x10   : > { %1078 = vmatmul.msk.f32.vlgmr.msra.gmra.mxu0 %vm481_vm0, %v474_v3 }
  0x13   : > { %v1101_v11 = vpop.eup %1100 }
  0x14   : > { %v541_v13 = vmul.f32 16.0, %v1101_v11  ;;  %vm545_vm2 = vweird.f32 %v1101_v11 }
  0x15   : > { %582 = vperm.xlu1 %1097, %v1239_v5   ;;  %594 = vperm.xlu2 %1098, %v1244_v6  }
  0x16   : > { %v542_v19 = vsub.f32 1.0, %v541_v13 }
  0x18   : > { %1079 = vmatmul.msk.f32.gmra.mxu0 %vm481_vm0, %v475_v7  ;;  %v543_v22 = vmul.f32 %v1101_v11, %v542_v19 }
  0x1a   : > { %v544_v25 = vadd.f32 %v1101_v11, %v543_v22 }
  0x1c   : > { %v1257_v28 = vsel %vm545_vm2, %v1101_v11, %v544_v25  ;;  %vm670_vm2 = vcmask 130048  }
  0x8d   : > { %v505_v9 = vpop.f32.mrf.mxu0 }
  0x8e   : > { %v514_v10 = vsel %vm513_vm1, %v505_v9, 0.0  ;;  %v511_v12 = vmax.f32 %v505_v9, 0.0 }
  0x8f   : > { %515 = vadd.xlane.f32.xlu0 %v514_v10 }
  0x90   : > { %v531_v17 = vsel %vm513_vm1, %v511_v12, 0.0 }
  0x95   : > { %v508_v14 = vpop.f32.mrf.mxu0 }
  0x96   : > { %v512_v15 = vmax.f32 %v508_v14, 0.0  ;;  %v517_v16 = vsel %vm513_vm1, %v508_v14, 0.0 }
  0x97   : > { %518 = vadd.xlane.f32.xlu0 %v517_v16 }
  0x98   : > { %v532_v18 = vsel %vm513_vm1, %v512_v15, 0.0 }
  0x99   : > { %v533_v20 = vadd.f32 %v532_v18, %v531_v17 }
  0x9b   : > { %v534_v21 = vrot.slane %v533_v20, 4 }
  0x9d   : > { %v535_v23 = vadd.f32 %v534_v21, %v533_v20 }
  0x9f   : > { %v536_v24 = vrot.slane %v535_v23, 2 }
  0xa1   : > { %v537_v26 = vadd.f32 %v536_v24, %v535_v23 }
  0xa3   : > { %v538_v27 = vrot.slane %v537_v26, 1 }
  0xa5   : > { %v539_v29 = vadd.f32 %v538_v27, %v537_v26 }
  0xa7   : > { %v547_v30 = vmul.f32 %v1257_v28, %v539_v29 }
  0xa9   : > { %v549_v31 = vsub.f32 %v512_v15, %v547_v30  ;;  %v548_v32 = vsub.f32 %v511_v12, %v547_v30 }
  0xab   : > { %v551_v33 = vmul.f32 %v549_v31, %v549_v31  ;;  %v550_v34 = vmul.f32 %v548_v32, %v548_v32 }
  0xad   : > { %v553_v35 = vsel %vm513_vm1, %v551_v33, 0.0  ;;  %v552_v36 = vsel %vm513_vm1, %v550_v34, 0.0 }
  0xae   : > { %v554_v37 = vadd.f32 %v553_v35, %v552_v36 }
  0xb0   : > { %v555_v38 = vrot.slane %v554_v37, 4 }
  0xb2   : > { %v556_v39 = vadd.f32 %v555_v38, %v554_v37 }
  0xb4   : > { %v557_v40 = vrot.slane %v556_v39, 2 }
  0xb6   : > { %v558_v41 = vadd.f32 %v557_v40, %v556_v39 }
  0xb8   : > { %v559_v42 = vrot.slane %v558_v41, 1 }
  0xba   : > { %v560_v43 = vadd.f32 %v559_v42, %v558_v41 }
  0xbc   : > { %v561_v44 = vmul.f32 %v560_v43, %v1257_v28 }
  0xbe   : > { %v562_v45 = vadd.f32 1e-05, %v561_v44  ;;  %v578_v44 = vpop.permute.xlu1 %577 }
  0xc0   : > { %1102 = vrsqrt.f32 %v562_v45  ;;  %vm569_vm4 = vweird.f32 %v562_v45 }
  0xc1   : > { %1104 = vrcp.f32 %v1130_v55 }
  0xc6   : > { %v1103_v46 = vpop.eup %1102 }
  0xc7   : > { %v564_v47 = vmul.f32 %v1103_v46, %v562_v45  ;;  %vm570_vm3 = vweird.f32 %v1103_v46  ;;  %v1105_v56 = vpop.eup %1104  ;;  %v590_v45 = vpop.permute.xlu2 %589 }
  0xc8   : > { %vm571_vm5 = vmor %vm569_vm4, %vm570_vm3  ;;  %v521_v57 = vmul.f32 64.0, %v1105_v56  ;;  %vm525_vm6 = vweird.f32 %v1105_v56  ;;  %vm901_vm3 = vcmask 7168  }
  0xc9   : > { %v565_v48 = vmul.f32 %v1103_v46, %v564_v47 }
  0xca   : > { %v522_v58 = vsub.f32 1.0, %v521_v57 }
  0xcb   : > { %v566_v49 = vmul.f32 0.5, %v565_v48 }
  0xcc   : > { %v523_v59 = vmul.f32 %v1105_v56, %v522_v58 }
  0xcd   : > { %v567_v50 = vsub.f32 1.5, %v566_v49 }
  0xce   : > { %v524_v60 = vadd.f32 %v1105_v56, %v523_v59 }
  0xcf   : > { %v568_v51 = vmul.f32 %v1103_v46, %v567_v50  ;;  %v595_v49 = vpop.permute.xlu2 %594 }
  0xd0   : > { %v1263_v62 = vsel %vm525_vm6, %v1105_v56, %v524_v60 }
  0xd1   : > { %v572_v52 = vsel %vm571_vm5, %v1103_v46, %v568_v51  ;;  %v583_v46 = vpop.permute.xlu1 %582 }
  0xd2   : > { %v573_v53 = vmul.f32 %v572_v52, %v548_v32  ;;  %v574_v54 = vmul.f32 %v572_v52, %v549_v31 }
  0xd4   : > { %v585_v47 = vmul.f32 %v578_v44, %v573_v53  ;;  %v586_v48 = vmul.f32 %v583_v46, %v574_v54  ;;  %v1322_v44 = vld [vmem:[%s1373_s7] sm:$0xff] }
  0xd6   : > { %v597_v50 = vadd.f32 %v590_v45, %v585_v47  ;;  %v598_v51 = vadd.f32 %v595_v49, %v586_v48 }
 0x102   : > { %v516_v61 = vpop.xlane.xlu0 %515 }
 0x103   : > { %v527_v63 = vmul.f32 %v1263_v62, %v516_v61 }
 0x105   : > { %v529_v7 = vmax.f32 %v527_v63, 0.0 }
 0x10a   : > { %v519_v1 = vpop.xlane.xlu0 %518 }
 0x10b   : > { %v528_v3 = vmul.f32 %v1263_v62, %v519_v1 }
 0x10d   : > { %v530_v8 = vmax.f32 %v528_v3, 0.0 }
 0x10f   : > { %v599_v9 = vadd.f32 %v530_v8, %v529_v7  ;;  %688 = vmatpush.msra.mxu1 %v530_v8 }
 0x111   : > { %v600_v10 = vrot.slane %v599_v9, 4  ;;  %689 = vmatpush.msra.mxu1 %v529_v7 }
 0x113   : > { %v601_v11 = vadd.f32 %v600_v10, %v599_v9  ;;  %v1280_v10 = vld [vmem:[%s1372_s6 + $0x8] sm:$0xff] }
 0x115   : > { %v602_v12 = vrot.slane %v601_v11, 2 }
 0x117   : > { %v603_v13 = vadd.f32 %v602_v12, %v601_v11  ;;  %v1286_v11 = vld [vmem:[%s1373_s7 + $0x8] sm:$0xff] }
 0x119   : > { %v604_v14 = vrot.slane %v603_v13, 1 }
 0x11b   : > { %v605_v15 = vadd.f32 %v604_v14, %v603_v13 }
 0x11d   : > { %v606_v16 = vmul.f32 %v605_v15, %v1257_v28 }
 0x11f   : > { %v607_v17 = vsub.f32 %v529_v7, %v606_v16  ;;  %v608_v18 = vsub.f32 %v530_v8, %v606_v16  ;;  %v694_v16 = vld [vmem:[%s1371_s5] sm:$0xff] }
 0x121   : > { %v609_v19 = vmul.f32 %v607_v17, %v607_v17  ;;  %v610_v20 = vmul.f32 %v608_v18, %v608_v18 }
 0x123   : > { %v611_v21 = vadd.f32 %v610_v20, %v609_v19 }
 0x125   : > { %v612_v22 = vrot.slane %v611_v21, 4 }
 0x127   : > { %v613_v23 = vadd.f32 %v612_v22, %v611_v21 }
 0x129   : > { %v614_v24 = vrot.slane %v613_v23, 2 }
 0x12b   : > { %v615_v25 = vadd.f32 %v614_v24, %v613_v23 }
 0x12d   : > { %v616_v26 = vrot.slane %v615_v25, 1 }
 0x12f   : > { %v617_v27 = vadd.f32 %v616_v26, %v615_v25 }
 0x131   : > { %v618_v29 = vmul.f32 %v617_v27, %v1257_v28 }
 0x133   : > { %v619_v30 = vadd.f32 1e-05, %v618_v29 }
 0x135   : > { %1106 = vrsqrt.f32 %v619_v30  ;;  %vm626_vm8 = vweird.f32 %v619_v30 }
 0x13b   : > { %v1107_v31 = vpop.eup %1106 }
 0x13c   : > { %v621_v32 = vmul.f32 %v1107_v31, %v619_v30  ;;  %vm627_vm7 = vweird.f32 %v1107_v31 }
 0x13d   : > { %vm628_vm9 = vmor %vm626_vm8, %vm627_vm7 }
 0x13e   : > { %v622_v33 = vmul.f32 %v1107_v31, %v621_v32 }
 0x140   : > { %v623_v34 = vmul.f32 0.5, %v622_v33 }
 0x142   : > { %v624_v35 = vsub.f32 1.5, %v623_v34 }
 0x144   : > { %v625_v36 = vmul.f32 %v1107_v31, %v624_v35 }
 0x146   : > { %v629_v37 = vsel %vm628_vm9, %v1107_v31, %v625_v36 }
 0x147   : > { %v631_v38 = vmul.f32 %v629_v37, %v608_v18  ;;  %v630_v39 = vmul.f32 %v629_v37, %v607_v17  ;;  %v695_v17 = vld [vmem:[%s1371_s5 + $0x8] sm:$0xff] }
 0x149   : > { %v633_v40 = vmul.f32 %v631_v38, %v1239_v5  ;;  %v632_v41 = vmul.f32 %v630_v39, %v1212_v0  ;;  %v1314_v38 = vld [vmem:[%s1372_s6] sm:$0xff] }
 0x14b   : > { %v635_v42 = vadd.f32 %v633_v40, %v1244_v6  ;;  %v634_v43 = vadd.f32 %v632_v41, %v1217_v2 }
 0x14d   : > { %643 = vperm.xlu1 %1097, %v635_v42   ;;  %638 = vperm.xlu0 %1099, %v634_v43  }
 0x1bf   : > { %v644_v52 = vpop.permute.xlu1 %643  ;;  %v639_v55 = vpop.permute.xlu0 %638 }
 0x1c0   : > { %v647_v56 = vmul.f32 %v644_v52, %v598_v51  ;;  %v646_v5 = vmul.f32 %v639_v55, %v597_v50 }
 0x1c2   : > { %v649_v0 = vsel %vm513_vm1, %v647_v56, 0.0  ;;  %v648_v6 = vsel %vm513_vm1, %v646_v5, 0.0 }
 0x1c3   : > { %v650_v57 = vadd.f32 %v649_v0, %v648_v6 }
 0x1c5   : > { %v651_v2 = vrot.slane %v650_v57, 4 }
 0x1c7   : > { %v652_v58 = vadd.f32 %v651_v2, %v650_v57 }
 0x1c9   : > { %v653_v59 = vrot.slane %v652_v58, 2 }
 0x1cb   : > { %v654_v60 = vadd.f32 %v653_v59, %v652_v58 }
 0x1cd   : > { %v655_v61 = vrot.slane %v654_v60, 1 }
 0x1cf   : > { %v656_v63 = vadd.f32 %v655_v61, %v654_v60 }
 0x1d1   : > { %v657_v53 = vmul.f32 0.25, %v656_v63 }
 0x1d3   : > { %v658_v54 = vsel %vm513_vm1, %v657_v53, -inf }
 0x1d4   : > { %659 = vmax.xlane.f32.xlu2 %v658_v54 }
 0x247   : > { %v660_v1 = vpop.xlane.xlu2 %659 }
 0x248   : > { %v661_v3 = vsub.f32 %v657_v53, %v660_v1 }
 0x24a   : > { %v662_v7 = vmul.f32 1.442695, %v661_v3 }
 0x24c   : > { %1108 = vpow2.f32 %v662_v7 }
 0x252   : > { %v1109_v8 = vpop.eup %1108 }
 0x253   : > { %v664_v9 = vsel %vm513_vm1, %v1109_v8, 0.0 }
 0x254   : > { %665 = vadd.xlane.f32.xlu1 %v664_v9 }
 0x26d   : > { %786 = vperm.xlu1 %1097, %v1280_v10  }
 0x275   : > { %798 = vperm.xlu1 %1097, %v1286_v11  }
 0x2c7   : > { %v666_v12 = vpop.xlane.xlu1 %665 }
 0x2c8   : > { %1110 = vrcp.f32 %v666_v12 }
 0x2ce   : > { %v1111_v13 = vpop.eup %1110 }
 0x2cf   : > { %v668_v14 = vmul.f32 %v1111_v13, %v1109_v8 }
 0x2d1   : > { %v1294_v15 = vmul.f32 %v668_v14, %v1233_v4  ;;  %899 = vst.msk [vmem:[%s461_s18] sm:$0x1] %vm898_vm10, %v668_v14 }
 0x2d3   : > { %722 = vmatpush.msra.mxu2 %v1294_v15 }
 0x2d4   : > { %1081 = vmatmul.msk.f32.vlgmr.msra.gmra.mxu2 %vm481_vm0, %v694_v16 }
 0x2dc   : > { %1082 = vmatmul.msk.f32.gmra.mxu2 %vm481_vm0, %v695_v17 }
 0x357   : > { %v724_v18 = vpop.f32.mrf.mxu2 }
 0x358   : > { %v732_v4 = vsel %vm513_vm1, %v724_v18, 0.0  ;;  %v730_v19 = vmax.f32 %v724_v18, 0.0 }
 0x359   : > { %733 = vadd.xlane.f32.xlu0 %v732_v4 }
 0x35a   : > { %v742_v23 = vsel %vm513_vm1, %v730_v19, 0.0 }
 0x35f   : > { %v727_v20 = vpop.f32.mrf.mxu2 }
 0x360   : > { %v731_v21 = vmax.f32 %v727_v20, 0.0  ;;  %v735_v22 = vsel %vm513_vm1, %v727_v20, 0.0 }
 0x361   : > { %736 = vadd.xlane.f32.xlu2 %v735_v22 }
 0x362   : > { %v743_v24 = vsel %vm513_vm1, %v731_v21, 0.0 }
 0x363   : > { %v744_v25 = vadd.f32 %v743_v24, %v742_v23 }
 0x365   : > { %v745_v26 = vrot.slane %v744_v25, 4 }
 0x367   : > { %v746_v27 = vadd.f32 %v745_v26, %v744_v25 }
 0x369   : > { %v747_v29 = vrot.slane %v746_v27, 2 }
 0x36b   : > { %v748_v30 = vadd.f32 %v747_v29, %v746_v27 }
 0x36d   : > { %v749_v31 = vrot.slane %v748_v30, 1 }
 0x36f   : > { %v750_v32 = vadd.f32 %v749_v31, %v748_v30 }
 0x371   : > { %v751_v33 = vmul.f32 %v750_v32, %v1257_v28 }
 0x373   : > { %v753_v34 = vsub.f32 %v731_v21, %v751_v33  ;;  %v752_v35 = vsub.f32 %v730_v19, %v751_v33 }
 0x375   : > { %v755_v36 = vmul.f32 %v753_v34, %v753_v34  ;;  %v754_v37 = vmul.f32 %v752_v35, %v752_v35 }
 0x377   : > { %v757_v39 = vsel %vm513_vm1, %v755_v36, 0.0  ;;  %v756_v40 = vsel %vm513_vm1, %v754_v37, 0.0 }
 0x378   : > { %v758_v41 = vadd.f32 %v757_v39, %v756_v40 }
 0x379   : > { %781 = vperm.xlu2 %1098, %v1314_v38  }
 0x37a   : > { %v759_v42 = vrot.slane %v758_v41, 4 }
 0x37c   : > { %v760_v43 = vadd.f32 %v759_v42, %v758_v41  ;;  %v787_v41 = vpop.permute.xlu1 %786 }
 0x37e   : > { %v761_v45 = vrot.slane %v760_v43, 2 }
 0x380   : > { %v762_v46 = vadd.f32 %v761_v45, %v760_v43 }
 0x381   : > { %793 = vperm.xlu2 %1098, %v1322_v44  }
 0x382   : > { %v763_v47 = vrot.slane %v762_v46, 1 }
 0x384   : > { %v764_v48 = vadd.f32 %v763_v47, %v762_v46 }
 0x386   : > { %v765_v49 = vmul.f32 %v764_v48, %v1257_v28  ;;  %v799_v48 = vpop.permute.xlu1 %798 }
 0x388   : > { %v766_v50 = vadd.f32 1e-05, %v765_v49 }
 0x38a   : > { %1112 = vrsqrt.f32 %v766_v50  ;;  %vm773_vm12 = vweird.f32 %v766_v50 }
 0x390   : > { %v1113_v51 = vpop.eup %1112 }
 0x391   : > { %v768_v52 = vmul.f32 %v1113_v51, %v766_v50  ;;  %vm774_vm11 = vweird.f32 %v1113_v51 }
 0x392   : > { %vm775_vm13 = vmor %vm773_vm12, %vm774_vm11 }
 0x393   : > { %v769_v55 = vmul.f32 %v1113_v51, %v768_v52 }
 0x395   : > { %v770_v56 = vmul.f32 0.5, %v769_v55 }
 0x397   : > { %v771_v5 = vsub.f32 1.5, %v770_v56 }
 0x399   : > { %v772_v0 = vmul.f32 %v1113_v51, %v771_v5 }
 0x39b   : > { %v776_v6 = vsel %vm775_vm13, %v1113_v51, %v772_v0 }
 0x39c   : > { %v777_v57 = vmul.f32 %v776_v6, %v752_v35  ;;  %v778_v2 = vmul.f32 %v776_v6, %v753_v34 }
 0x39e   : > { %v790_v45 = vmul.f32 %v787_v41, %v778_v2 }
 0x3a0   : > { %v802_v50 = vadd.f32 %v799_v48, %v790_v45 }
 0x3cc   : > { %v734_v58 = vpop.xlane.xlu0 %733 }
 0x3cd   : > { %v738_v59 = vmul.f32 %v734_v58, %v1263_v62  ;;  %v700_v58 = vld [vmem:[%s1374_s8] sm:$0xff] }
 0x3cf   : > { %v740_v63 = vmax.f32 %v738_v59, 0.0  ;;  %v480_v59 = vld [vmem:[%s1370_s4] sm:$0xff] }
 0x3d0   : > { %1080 = vmatmul.msk.f32.vlgmr.msra.gmra.mxu1 %vm670_vm2, %v480_v59 }
 0x3d4   : > { %v737_v60 = vpop.xlane.xlu2 %736 }
 0x3d5   : > { %v739_v61 = vmul.f32 %v737_v60, %v1263_v62 }
 0x3d7   : > { %v741_v53 = vmax.f32 %v739_v61, 0.0 }
 0x3d9   : > { %v803_v54 = vadd.f32 %v741_v53, %v740_v63  ;;  %891 = vmatpush.msra.mxu3 %v741_v53 }
 0x3db   : > { %v804_v1 = vrot.slane %v803_v54, 4  ;;  %892 = vmatpush.msra.mxu3 %v740_v63 }
 0x3dc   : > { %v782_v40 = vpop.permute.xlu2 %781  ;;  %1083 = vmatmul.msk.f32.vlgmr.msra.gmra.mxu3 %vm670_vm2, %v700_v58 }
 0x3dd   : > { %v805_v3 = vadd.f32 %v804_v1, %v803_v54  ;;  %v789_v43 = vmul.f32 %v782_v40, %v777_v57 }
 0x3df   : > { %v806_v7 = vrot.slane %v805_v3, 2 }
 0x3e1   : > { %v807_v8 = vadd.f32 %v806_v7, %v805_v3 }
 0x3e3   : > { %v808_v9 = vrot.slane %v807_v8, 1 }
 0x3e4   : > { %v794_v42 = vpop.permute.xlu2 %793 }
 0x3e5   : > { %v809_v12 = vadd.f32 %v808_v9, %v807_v8  ;;  %v801_v47 = vadd.f32 %v794_v42, %v789_v43 }
 0x3e7   : > { %v810_v13 = vmul.f32 %v809_v12, %v1257_v28 }
 0x3e9   : > { %v811_v14 = vsub.f32 %v740_v63, %v810_v13  ;;  %v812_v16 = vsub.f32 %v741_v53, %v810_v13 }
 0x3eb   : > { %v813_v17 = vmul.f32 %v811_v14, %v811_v14  ;;  %v814_v18 = vmul.f32 %v812_v16, %v812_v16 }
 0x3ed   : > { %v815_v4 = vadd.f32 %v814_v18, %v813_v17 }
 0x3ef   : > { %v816_v19 = vrot.slane %v815_v4, 4 }
 0x3f1   : > { %v817_v62 = vadd.f32 %v816_v19, %v815_v4 }
 0x3f3   : > { %v818_v20 = vrot.slane %v817_v62, 2 }
 0x3f5   : > { %v819_v21 = vadd.f32 %v818_v20, %v817_v62 }
 0x3f7   : > { %v820_v22 = vrot.slane %v819_v21, 1 }
 0x3f9   : > { %v821_v23 = vadd.f32 %v820_v22, %v819_v21 }
 0x3fb   : > { %v822_v24 = vmul.f32 %v821_v23, %v1257_v28 }
 0x3fd   : > { %v823_v25 = vadd.f32 1e-05, %v822_v24 }
 0x3ff   : > { %1114 = vrsqrt.f32 %v823_v25  ;;  %vm830_vm15 = vweird.f32 %v823_v25 }
 0x405   : > { %v1115_v26 = vpop.eup %1114 }
 0x406   : > { %v825_v27 = vmul.f32 %v1115_v26, %v823_v25  ;;  %vm831_vm14 = vweird.f32 %v1115_v26 }
 0x407   : > { %vm832_vm0 = vmor %vm830_vm15, %vm831_vm14 }
 0x408   : > { %v826_v29 = vmul.f32 %v1115_v26, %v825_v27 }
 0x40a   : > { %v827_v30 = vmul.f32 0.5, %v826_v29 }
 0x40c   : > { %v828_v31 = vsub.f32 1.5, %v827_v30 }
 0x40e   : > { %v829_v32 = vmul.f32 %v1115_v26, %v828_v31 }
 0x410   : > { %v833_v33 = vsel %vm832_vm0, %v1115_v26, %v829_v32 }
 0x411   : > { %v835_v34 = vmul.f32 %v833_v33, %v812_v16  ;;  %v834_v35 = vmul.f32 %v833_v33, %v811_v14 }
 0x413   : > { %v837_v36 = vmul.f32 %v835_v34, %v1280_v10  ;;  %v836_v37 = vmul.f32 %v834_v35, %v1314_v38 }
 0x415   : > { %v839_v28 = vadd.f32 %v837_v36, %v1286_v11  ;;  %v838_v39 = vadd.f32 %v836_v37, %v1322_v44 }
 0x417   : > { %847 = vperm.xlu0 %1099, %v839_v28   ;;  %842 = vperm.xlu2 %1098, %v838_v39  }
 0x44d   : > { %v691_v1 = vpop.f32.mrf.mxu1 }
 0x44e   : > { %902 = vst.msk [vmem:[%s468_s19] sm:$0xff] %vm901_vm3, %v691_v1 }
 0x45f   : > { %v894_v3 = vpop.f32.mrf.mxu3 }
 0x460   : > { %903 = vst.msk [vmem:[%s472_s22] sm:$0xff] %vm901_vm3, %v894_v3 }
 0x471   : > { %v843_v46 = vpop.permute.xlu2 %842 }
 0x472   : > { %v850_v49 = vmul.f32 %v843_v46, %v801_v47 }
 0x474   : > { %v852_v38 = vsel %vm513_vm1, %v850_v49, 0.0 }
 0x489   : > { %v848_v51 = vpop.permute.xlu0 %847 }
 0x48a   : > { %v851_v10 = vmul.f32 %v848_v51, %v802_v50 }
 0x48c   : > { %v853_v11 = vsel %vm513_vm1, %v851_v10, 0.0 }
 0x48d   : > { %v854_v52 = vadd.f32 %v853_v11, %v852_v38 }
 0x48f   : > { %v855_v44 = vrot.slane %v854_v52, 4 }
 0x491   : > { %v856_v55 = vadd.f32 %v855_v44, %v854_v52 }
 0x493   : > { %v857_v56 = vrot.slane %v856_v55, 2 }
 0x495   : > { %v858_v5 = vadd.f32 %v857_v56, %v856_v55 }
 0x497   : > { %v859_v0 = vrot.slane %v858_v5, 1 }
 0x499   : > { %v860_v6 = vadd.f32 %v859_v0, %v858_v5 }
 0x49b   : > { %v861_v57 = vmul.f32 0.25, %v860_v6 }
 0x49d   : > { %v862_v2 = vsel %vm513_vm1, %v861_v57, -inf }
 0x49e   : > { %863 = vmax.xlane.f32.xlu1 %v862_v2 }
 0x511   : > { %v864_v60 = vpop.xlane.xlu1 %863 }
 0x512   : > { %v865_v61 = vsub.f32 %v861_v57, %v864_v60 }
 0x514   : > { %v866_v63 = vmul.f32 1.442695, %v865_v61 }
 0x516   : > { %1116 = vpow2.f32 %v866_v63 }
 0x51c   : > { %v1117_v53 = vpop.eup %1116 }
 0x51d   : > { %v868_v54 = vsel %vm513_vm1, %v1117_v53, 0.0 }
 0x51e   : > { %869 = vadd.xlane.f32.xlu2 %v868_v54 }
 0x591   : > { %v870_v7 = vpop.xlane.xlu2 %869 }
 0x592   : > { %1118 = vrcp.f32 %v870_v7 }
 0x598   : > { %v1119_v8 = vpop.eup %1118 }
 0x599   : > { %v872_v9 = vmul.f32 %v1119_v8, %v1117_v53 }
 0x59b   : > { %v873_v12 = vmul.f32 %v872_v9, %v1294_v15  ;;  %900 = vst.msk [vmem:[%s464_s27] sm:$0x1] %vm898_vm10, %v872_v9 }
 0x59d   : > { %897 = vst.msk [vmem:[%s458_s30] sm:$0xff] %vm513_vm1, %v873_v12 }
 0x59e PF: > { %s24_s25 = sadd.s32 1, %s1126_s25  }
 0x59f   : > { %p21_p4 = scmp.ge.s32.totalorder %s24_s25, 4  }
 0x5a1   :  { %23 = sbr.rel (!%p21_p4) target bundleno = 1 (0x1), region = 134 }

</bundles_post_ra>
